<compile_context>
chip_gen: v7x
topology: tpu7x:2x2x1
jax: 0.10.0
libtpu: 0.0.40
codegen_flags: <defaults>
</compile_context>

<pallas_src>
import functools

import jax
import jax.numpy as jnp
from jax import lax
from jax.experimental import pallas as pl
from jax.experimental.pallas import tpu as pltpu


# --------------------------- parameter slab layout ---------------------------
def _align8(n):
    return ((n + 7) // 8) * 8


def _param_layout(H, lanes):
    """Row offsets (all 8-aligned) of each section inside the packed param slab."""
    off = {}
    r = 0

    def take(name, n):
        nonlocal r
        off[name] = r
        r = _align8(r + n)

    take("wih", lanes)   # (lanes, lanes)  K-padded W_ih^T (gate order i,f,g,o)
    take("whh", H)       # (H, lanes)      W_hh^T
    take("b",   1)       # (1, lanes)      b_ih + b_hh
    take("w1h", H)       # (H, lanes)      fused [actor|critic] layer-1, h part
    take("w1f", 1)       # (1, lanes)      fused layer-1, future-ref part
    take("b1",  1)       # (1, lanes)      fused layer-1 bias
    take("w2",  lanes)   # (lanes, lanes)  block-diag fused layer-2, K/N padded
    take("b2",  1)       # (1, lanes)      fused layer-2 bias
    return off, r


def pack_params(params):
    """Pack all weights into one lane-dense f32 slab (called once at init)."""
    H = params["whh"].shape[0]
    lanes = 4 * H
    assert lanes % 128 == 0, "4*hidden_dim must be a multiple of 128"
    off, rows = _param_layout(H, lanes)
    slab = jnp.zeros((rows, lanes), jnp.float32)

    # tanh(u) = 2*sigmoid(2u) - 1  ->  pre-scale g-gate pre-activations by 2.
    def gscale(w):
        return w.at[..., 2 * H:3 * H].multiply(2.0)

    wih = gscale(params["wih"])                                   # (in_dim, 4H)
    whh = gscale(params["whh"])                                   # (H, 4H)
    b = gscale(params["b"])                                       # (1, 4H)

    slab = slab.at[off["wih"]:off["wih"] + wih.shape[0], :].set(wih)
    slab = slab.at[off["whh"]:off["whh"] + H, :].set(whh)
    slab = slab.at[off["b"], :].set(b[0])

    # Fused actor/critic layer 1: columns [0:H]=actor, [H:2H]=critic.
    w1 = jnp.concatenate([params["w1a"], params["w1c"]], axis=1)  # (H+1, 2H)
    b1 = jnp.concatenate([params["b1a"], params["b1c"]], axis=1)  # (1, 2H)
    slab = slab.at[off["w1h"]:off["w1h"] + H, 0:2 * H].set(w1[0:H])
    slab = slab.at[off["w1f"], 0:2 * H].set(w1[H])
    slab = slab.at[off["b1"], 0:2 * H].set(b1[0])

    # Block-diagonal fused layer 2, padded to (lanes, lanes): col 0 actor, col 1 critic.
    slab = slab.at[off["w2"]:off["w2"] + H, 0].set(params["w2a"][:, 0])
    slab = slab.at[off["w2"] + H:off["w2"] + 2 * H, 1].set(params["w2c"][:, 0])
    slab = slab.at[off["b2"], 0].set(params["b2a"][0, 0])
    slab = slab.at[off["b2"], 1].set(params["b2c"][0, 0])
    return slab


# ----------------------------- Pallas kernel --------------------------------
def tempo_kernel(data_ref, p_ref, out_ref, *, T, H, Bblk):
    # data_ref : (T*Bblk + Bblk, lanes) time-major hist (lane-padded) then future ref
    # p_ref    : (prows, lanes)         packed parameter slab (see _param_layout)
    # out_ref  : (Bblk, lanes)          col 0 = actor, col 1 = critic, rest zero
    lanes = 4 * H
    TB = T * Bblk
    off, _ = _param_layout(H, lanes)

    wih = p_ref[off["wih"]:off["wih"] + lanes, :]                 # (lanes, lanes)
    whh = p_ref[off["whh"]:off["whh"] + H, :]                     # (H, lanes)
    b = p_ref[off["b"]:off["b"] + 1, :]                           # (1, lanes)

    # Hoisted input projection + bias for all timesteps in one dense MXU push:
    # (T*Bblk, lanes) @ (lanes, lanes) + (1, lanes)
    gates_x = jnp.dot(data_ref[0:TB, :], wih,
                      preferred_element_type=jnp.float32) + b

    h = jnp.zeros((Bblk, H), jnp.float32)
    c = jnp.zeros((Bblk, H), jnp.float32)

    # Fully unrolled recurrence (T static). One (Bblk,H)@(H,4H) dot per step,
    # one full-width sigmoid, one quarter-width tanh(c); tanh(g) recovered via
    # the sigmoid identity (g-gate columns were pre-scaled by 2 at pack time).
    for t in range(T):
        g_t = gates_x[t * Bblk:(t + 1) * Bblk, :] + jnp.dot(
            h, whh, preferred_element_type=jnp.float32)           # (Bblk, 4H)
        sig = jax.nn.sigmoid(g_t)
        i_g = sig[:, 0:H]
        f_g = sig[:, H:2 * H]
        g_g = 2.0 * sig[:, 2 * H:3 * H] - 1.0                     # tanh(g)
        o_g = sig[:, 3 * H:4 * H]
        c = f_g * c + i_g * g_g
        h = o_g * jnp.tanh(c)

    fut = data_ref[TB:TB + Bblk, 0:1]                             # (Bblk, 1)

    # combined = [h | fut]; layer 1 split into H-wide matmul + 1-wide broadcast
    # mul to avoid a lane concat.
    w1h = p_ref[off["w1h"]:off["w1h"] + H, :]                     # (H, lanes)
    w1f = p_ref[off["w1f"]:off["w1f"] + 1, :]                     # (1, lanes)
    b1 = p_ref[off["b1"]:off["b1"] + 1, :]                        # (1, lanes)
    z1 = (jnp.dot(h, w1h, preferred_element_type=jnp.float32)
          + fut * w1f + b1)
    a1 = jnp.maximum(z1, 0.0)                                     # (Bblk, lanes)

    w2 = p_ref[off["w2"]:off["w2"] + lanes, :]                    # (lanes, lanes)
    b2 = p_ref[off["b2"]:off["b2"] + 1, :]                        # (1, lanes)
    out_ref[...] = jnp.dot(a1, w2,
                           preferred_element_type=jnp.float32) + b2


# ------------------------------- wrapper -------------------------------------
def tempo_predictor(x, pslab):
    B, F = x.shape
    hist_feat = F - 1
    T = hist_feat // 2
    lanes = pslab.shape[1]
    H = lanes // 4
    Bblk = 8
    nb = pl.cdiv(B, Bblk)
    Bp = nb * Bblk
    pad = Bp - B

    fut = x[:, -1:]                                               # (B, 1)
    hist = x[:, :hist_feat].reshape(B, T, 2)                      # (B, T, 2)

    # Build the per-call activation slab: for each 8-row batch block, T*8 rows
    # of time-major history (lane-padded) followed by 8 rows of future ref.
    hist_tm = jnp.transpose(hist, (1, 0, 2))                      # (T, B, 2)
    hist_tm = jnp.pad(hist_tm, ((0, 0), (0, pad), (0, 0)))        # (T, Bp, 2)
    hist_blk = hist_tm.reshape(T, nb, Bblk, 2).transpose(1, 0, 2, 3)
    hist_blk = hist_blk.reshape(nb, T * Bblk, 2)
    hist_blk = jnp.pad(hist_blk, ((0, 0), (0, 0), (0, lanes - 2)))

    fut_blk = jnp.pad(fut, ((0, pad), (0, 0))).reshape(nb, Bblk, 1)
    fut_blk = jnp.pad(fut_blk, ((0, 0), (0, 0), (0, lanes - 1)))

    rows = T * Bblk + Bblk
    data = jnp.concatenate([hist_blk, fut_blk], axis=1).reshape(nb * rows, lanes)

    prows = pslab.shape[0]
    kernel = functools.partial(tempo_kernel, T=T, H=H, Bblk=Bblk)

    out = pl.pallas_call(
        kernel,
        out_shape=jax.ShapeDtypeStruct((Bp, lanes), jnp.float32),
        grid=(nb,),
        in_specs=[
            pl.BlockSpec((rows, lanes), lambda i: (i, 0)),
            pl.BlockSpec((prows, lanes), lambda i: (0, 0)),
        ],
        out_specs=pl.BlockSpec((Bblk, lanes), lambda i: (i, 0)),
        compiler_params=pltpu.CompilerParams(
            dimension_semantics=("parallel",)),
    )(data, pslab)

    return out[:B, 0:1], out[:B, 1:2]


# ------------------------- deterministic parameters ---------------------------
def init_params(key, hist_input_dim, hidden_dim, decoder_input_dim=1):
    H = hidden_dim
    ks = jax.random.split(key, 12)
    u = lambda k, shape, bound: jax.random.uniform(
        k, shape, jnp.float32, minval=-bound, maxval=bound)
    kb = 1.0 / jnp.sqrt(H)
    return {
        # LSTM (gate order i, f, g, o), stored transposed for the kernel
        "wih": u(ks[0], (hist_input_dim, 4 * H), kb),
        "whh": u(ks[1], (H, 4 * H), kb),
        "b":   u(ks[2], (1, 4 * H), kb) + u(ks[3], (1, 4 * H), kb),  # b_ih + b_hh
        # actor head
        "w1a": u(ks[4], (H + decoder_input_dim, H), kb),
        "b1a": u(ks[5], (1, H), kb),
        "w2a": u(ks[6], (H, 1), kb),
        "b2a": u(ks[7], (1, 1), kb),
        # critic head
        "w1c": u(ks[8], (H + decoder_input_dim, H), kb),
        "b1c": u(ks[9], (1, H), kb),
        "w2c": u(ks[10], (H, 1), kb),
        "b2c": u(ks[11], (1, 1), kb),
    }


# ---------------------------- pure-JAX reference ------------------------------
def reference(x, params):
    B, F = x.shape
    hist_feat = F - 1
    T = hist_feat // 2
    H = params["whh"].shape[0]
    fut = x[:, -1:]
    hist = x[:, :hist_feat].reshape(B, T, 2)

    def step(carry, x_t):
        h, c = carry
        gates = x_t @ params["wih"] + h @ params["whh"] + params["b"]
        i_g = jax.nn.sigmoid(gates[:, 0:H])
        f_g = jax.nn.sigmoid(gates[:, H:2 * H])
        g_g = jnp.tanh(gates[:, 2 * H:3 * H])
        o_g = jax.nn.sigmoid(gates[:, 3 * H:4 * H])
        c = f_g * c + i_g * g_g
        h = o_g * jnp.tanh(c)
        return (h, c), None

    h0 = jnp.zeros((B, H), jnp.float32)
    (h, _), _ = lax.scan(step, (h0, h0), jnp.transpose(hist, (1, 0, 2)))
    combined = jnp.concatenate([h, fut], axis=1)

    def head(w1, b1, w2, b2):
        return jnp.maximum(combined @ w1 + b1, 0.0) @ w2 + b2

    return (head(params["w1a"], params["b1a"], params["w2a"], params["b2a"]),
            head(params["w1c"], params["b1c"], params["w2c"], params["b2c"]))


# ---------------------------------- main --------------------------------------
if __name__ == "__main__":
    hist_input_dim = 2
    hidden_dim = 32
    window = 8
    batch = 2

    key = jax.random.PRNGKey(0)
    k_x, k_p = jax.random.split(key)
    x = jax.random.normal(k_x, (batch, 2 * window + 1), jnp.float32)
    params = init_params(k_p, hist_input_dim, hidden_dim)

    # Pack/fuse all weights once at init (hoisted out of the per-call path).
    pslab = jax.block_until_ready(pack_params(params))

    run = jax.jit(tempo_predictor)
    actor, critic = jax.block_until_ready(run(x, pslab))
    ref_actor, ref_critic = reference(x, params)

    assert actor.shape == (batch, 1) and critic.shape == (batch, 1)
    assert jnp.allclose(actor, ref_actor, atol=1e-4, rtol=1e-4)
    assert jnp.allclose(critic, ref_critic, atol=1e-4, rtol=1e-4)
    print("KERNEL_OK")
</pallas_src>

<mosaic_0001>
module attributes {stable_mosaic.version = 11 : i64} {
  func.func @tempo_kernel(%arg0: i32, %arg1: memref<72x128xf32, #tpu.memory_space<vmem>>, %arg2: memref<352x128xf32, #tpu.memory_space<vmem>>, %arg3: memref<8x128xf32, #tpu.memory_space<vmem>>) attributes {dimension_semantics = [#tpu.dimension_semantics<parallel>], iteration_bounds = array<i64: 1>, scalar_prefetch = 0 : i64, scratch_operands = 0 : i64, tpu.core_type = #tpu.core_type<tc>, window_params = [{transform_indices = @transform_0, window_bounds = array<i64: 72, 128>}, {pipeline_mode = #tpu.pipeline_mode<synchronous>, transform_indices = @transform_1, window_bounds = array<i64: 352, 128>}, {transform_indices = @transform_2, window_bounds = array<i64: 8, 128>}]} {
    %c0 = arith.constant 0 : index
    %c0_0 = arith.constant 0 : index
    %0 = vector.load %arg2[%c0, %c0_0] : memref<352x128xf32, #tpu.memory_space<vmem>>, vector<128x128xf32>
    %c128 = arith.constant 128 : index
    %c0_1 = arith.constant 0 : index
    %1 = vector.load %arg2[%c128, %c0_1] : memref<352x128xf32, #tpu.memory_space<vmem>>, vector<32x128xf32>
    %c160 = arith.constant 160 : index
    %c0_2 = arith.constant 0 : index
    %2 = vector.load %arg2[%c160, %c0_2] : memref<352x128xf32, #tpu.memory_space<vmem>>, vector<1x128xf32>
    %c0_3 = arith.constant 0 : index
    %c0_4 = arith.constant 0 : index
    %3 = vector.load %arg1[%c0_3, %c0_4] : memref<72x128xf32, #tpu.memory_space<vmem>>, vector<64x128xf32>
    %cst = arith.constant dense<0.000000e+00> : vector<64x128xf32>
    %4 = tpu.matmul %3, %0, %cst {dimension_numbers = #tpu.dot_dimension_numbers<[1], [0], [0], [1], [0, 0, 1, 1], [], []>} : vector<64x128xf32>, vector<128x128xf32>, vector<64x128xf32> -> vector<64x128xf32>
    %5 = vector.broadcast %2 : vector<1x128xf32> to vector<64x128xf32>
    %6 = arith.addf %4, %5 : vector<64x128xf32>
    %cst_5 = arith.constant 0.000000e+00 : f32
    %7 = vector.broadcast %cst_5 : f32 to vector<8x32xf32>
    %cst_6 = arith.constant 0.000000e+00 : f32
    %8 = vector.broadcast %cst_6 : f32 to vector<8x32xf32>
    %9 = vector.extract_strided_slice %6 {offsets = [0, 0], sizes = [8, 128], strides = [1, 1]} : vector<64x128xf32> to vector<8x128xf32>
    %cst_7 = arith.constant dense<0.000000e+00> : vector<8x128xf32>
    %10 = tpu.matmul %7, %1, %cst_7 {dimension_numbers = #tpu.dot_dimension_numbers<[1], [0], [0], [1], [0, 0, 1, 1], [], []>} : vector<8x32xf32>, vector<32x128xf32>, vector<8x128xf32> -> vector<8x128xf32>
    %11 = arith.addf %9, %10 : vector<8x128xf32>
    %12 = arith.negf %11 : vector<8x128xf32>
    %13 = math.exp %12 : vector<8x128xf32>
    %cst_8 = arith.constant 1.000000e+00 : f32
    %14 = vector.broadcast %cst_8 : f32 to vector<8x128xf32>
    %15 = arith.addf %14, %13 : vector<8x128xf32>
    %16 = arith.divf %14, %15 : vector<8x128xf32>
    %17 = vector.extract_strided_slice %16 {offsets = [0, 0], sizes = [8, 32], strides = [1, 1]} : vector<8x128xf32> to vector<8x32xf32>
    %18 = vector.extract_strided_slice %16 {offsets = [0, 32], sizes = [8, 32], strides = [1, 1]} : vector<8x128xf32> to vector<8x32xf32>
    %19 = vector.extract_strided_slice %16 {offsets = [0, 64], sizes = [8, 32], strides = [1, 1]} : vector<8x128xf32> to vector<8x32xf32>
    %cst_9 = arith.constant 2.000000e+00 : f32
    %20 = vector.broadcast %cst_9 : f32 to vector<8x32xf32>
    %21 = arith.mulf %20, %19 : vector<8x32xf32>
    %cst_10 = arith.constant 1.000000e+00 : f32
    %22 = vector.broadcast %cst_10 : f32 to vector<8x32xf32>
    %23 = arith.subf %21, %22 : vector<8x32xf32>
    %24 = vector.extract_strided_slice %16 {offsets = [0, 96], sizes = [8, 32], strides = [1, 1]} : vector<8x128xf32> to vector<8x32xf32>
    %25 = arith.mulf %18, %8 : vector<8x32xf32>
    %26 = arith.mulf %17, %23 : vector<8x32xf32>
    %27 = arith.addf %25, %26 : vector<8x32xf32>
    %28 = math.tanh %27 : vector<8x32xf32>
    %29 = arith.mulf %24, %28 : vector<8x32xf32>
    %30 = vector.extract_strided_slice %6 {offsets = [8, 0], sizes = [8, 128], strides = [1, 1]} : vector<64x128xf32> to vector<8x128xf32>
    %cst_11 = arith.constant dense<0.000000e+00> : vector<8x128xf32>
    %31 = tpu.matmul %29, %1, %cst_11 {dimension_numbers = #tpu.dot_dimension_numbers<[1], [0], [0], [1], [0, 0, 1, 1], [], []>} : vector<8x32xf32>, vector<32x128xf32>, vector<8x128xf32> -> vector<8x128xf32>
    %32 = arith.addf %30, %31 : vector<8x128xf32>
    %33 = arith.negf %32 : vector<8x128xf32>
    %34 = math.exp %33 : vector<8x128xf32>
    %cst_12 = arith.constant 1.000000e+00 : f32
    %35 = vector.broadcast %cst_12 : f32 to vector<8x128xf32>
    %36 = arith.addf %35, %34 : vector<8x128xf32>
    %37 = arith.divf %35, %36 : vector<8x128xf32>
    %38 = vector.extract_strided_slice %37 {offsets = [0, 0], sizes = [8, 32], strides = [1, 1]} : vector<8x128xf32> to vector<8x32xf32>
    %39 = vector.extract_strided_slice %37 {offsets = [0, 32], sizes = [8, 32], strides = [1, 1]} : vector<8x128xf32> to vector<8x32xf32>
    %40 = vector.extract_strided_slice %37 {offsets = [0, 64], sizes = [8, 32], strides = [1, 1]} : vector<8x128xf32> to vector<8x32xf32>
    %cst_13 = arith.constant 2.000000e+00 : f32
    %41 = vector.broadcast %cst_13 : f32 to vector<8x32xf32>
    %42 = arith.mulf %41, %40 : vector<8x32xf32>
    %cst_14 = arith.constant 1.000000e+00 : f32
    %43 = vector.broadcast %cst_14 : f32 to vector<8x32xf32>
    %44 = arith.subf %42, %43 : vector<8x32xf32>
    %45 = vector.extract_strided_slice %37 {offsets = [0, 96], sizes = [8, 32], strides = [1, 1]} : vector<8x128xf32> to vector<8x32xf32>
    %46 = arith.mulf %39, %27 : vector<8x32xf32>
    %47 = arith.mulf %38, %44 : vector<8x32xf32>
    %48 = arith.addf %46, %47 : vector<8x32xf32>
    %49 = math.tanh %48 : vector<8x32xf32>
    %50 = arith.mulf %45, %49 : vector<8x32xf32>
    %51 = vector.extract_strided_slice %6 {offsets = [16, 0], sizes = [8, 128], strides = [1, 1]} : vector<64x128xf32> to vector<8x128xf32>
    %cst_15 = arith.constant dense<0.000000e+00> : vector<8x128xf32>
    %52 = tpu.matmul %50, %1, %cst_15 {dimension_numbers = #tpu.dot_dimension_numbers<[1], [0], [0], [1], [0, 0, 1, 1], [], []>} : vector<8x32xf32>, vector<32x128xf32>, vector<8x128xf32> -> vector<8x128xf32>
    %53 = arith.addf %51, %52 : vector<8x128xf32>
    %54 = arith.negf %53 : vector<8x128xf32>
    %55 = math.exp %54 : vector<8x128xf32>
    %cst_16 = arith.constant 1.000000e+00 : f32
    %56 = vector.broadcast %cst_16 : f32 to vector<8x128xf32>
    %57 = arith.addf %56, %55 : vector<8x128xf32>
    %58 = arith.divf %56, %57 : vector<8x128xf32>
    %59 = vector.extract_strided_slice %58 {offsets = [0, 0], sizes = [8, 32], strides = [1, 1]} : vector<8x128xf32> to vector<8x32xf32>
    %60 = vector.extract_strided_slice %58 {offsets = [0, 32], sizes = [8, 32], strides = [1, 1]} : vector<8x128xf32> to vector<8x32xf32>
    %61 = vector.extract_strided_slice %58 {offsets = [0, 64], sizes = [8, 32], strides = [1, 1]} : vector<8x128xf32> to vector<8x32xf32>
    %cst_17 = arith.constant 2.000000e+00 : f32
    %62 = vector.broadcast %cst_17 : f32 to vector<8x32xf32>
    %63 = arith.mulf %62, %61 : vector<8x32xf32>
    %cst_18 = arith.constant 1.000000e+00 : f32
    %64 = vector.broadcast %cst_18 : f32 to vector<8x32xf32>
    %65 = arith.subf %63, %64 : vector<8x32xf32>
    %66 = vector.extract_strided_slice %58 {offsets = [0, 96], sizes = [8, 32], strides = [1, 1]} : vector<8x128xf32> to vector<8x32xf32>
    %67 = arith.mulf %60, %48 : vector<8x32xf32>
    %68 = arith.mulf %59, %65 : vector<8x32xf32>
    %69 = arith.addf %67, %68 : vector<8x32xf32>
    %70 = math.tanh %69 : vector<8x32xf32>
    %71 = arith.mulf %66, %70 : vector<8x32xf32>
    %72 = vector.extract_strided_slice %6 {offsets = [24, 0], sizes = [8, 128], strides = [1, 1]} : vector<64x128xf32> to vector<8x128xf32>
    %cst_19 = arith.constant dense<0.000000e+00> : vector<8x128xf32>
    %73 = tpu.matmul %71, %1, %cst_19 {dimension_numbers = #tpu.dot_dimension_numbers<[1], [0], [0], [1], [0, 0, 1, 1], [], []>} : vector<8x32xf32>, vector<32x128xf32>, vector<8x128xf32> -> vector<8x128xf32>
    %74 = arith.addf %72, %73 : vector<8x128xf32>
    %75 = arith.negf %74 : vector<8x128xf32>
    %76 = math.exp %75 : vector<8x128xf32>
    %cst_20 = arith.constant 1.000000e+00 : f32
    %77 = vector.broadcast %cst_20 : f32 to vector<8x128xf32>
    %78 = arith.addf %77, %76 : vector<8x128xf32>
    %79 = arith.divf %77, %78 : vector<8x128xf32>
    %80 = vector.extract_strided_slice %79 {offsets = [0, 0], sizes = [8, 32], strides = [1, 1]} : vector<8x128xf32> to vector<8x32xf32>
    %81 = vector.extract_strided_slice %79 {offsets = [0, 32], sizes = [8, 32], strides = [1, 1]} : vector<8x128xf32> to vector<8x32xf32>
    %82 = vector.extract_strided_slice %79 {offsets = [0, 64], sizes = [8, 32], strides = [1, 1]} : vector<8x128xf32> to vector<8x32xf32>
    %cst_21 = arith.constant 2.000000e+00 : f32
    %83 = vector.broadcast %cst_21 : f32 to vector<8x32xf32>
    %84 = arith.mulf %83, %82 : vector<8x32xf32>
    %cst_22 = arith.constant 1.000000e+00 : f32
    %85 = vector.broadcast %cst_22 : f32 to vector<8x32xf32>
    %86 = arith.subf %84, %85 : vector<8x32xf32>
    %87 = vector.extract_strided_slice %79 {offsets = [0, 96], sizes = [8, 32], strides = [1, 1]} : vector<8x128xf32> to vector<8x32xf32>
    %88 = arith.mulf %81, %69 : vector<8x32xf32>
    %89 = arith.mulf %80, %86 : vector<8x32xf32>
    %90 = arith.addf %88, %89 : vector<8x32xf32>
    %91 = math.tanh %90 : vector<8x32xf32>
    %92 = arith.mulf %87, %91 : vector<8x32xf32>
    %93 = vector.extract_strided_slice %6 {offsets = [32, 0], sizes = [8, 128], strides = [1, 1]} : vector<64x128xf32> to vector<8x128xf32>
    %cst_23 = arith.constant dense<0.000000e+00> : vector<8x128xf32>
    %94 = tpu.matmul %92, %1, %cst_23 {dimension_numbers = #tpu.dot_dimension_numbers<[1], [0], [0], [1], [0, 0, 1, 1], [], []>} : vector<8x32xf32>, vector<32x128xf32>, vector<8x128xf32> -> vector<8x128xf32>
    %95 = arith.addf %93, %94 : vector<8x128xf32>
    %96 = arith.negf %95 : vector<8x128xf32>
    %97 = math.exp %96 : vector<8x128xf32>
    %cst_24 = arith.constant 1.000000e+00 : f32
    %98 = vector.broadcast %cst_24 : f32 to vector<8x128xf32>
    %99 = arith.addf %98, %97 : vector<8x128xf32>
    %100 = arith.divf %98, %99 : vector<8x128xf32>
    %101 = vector.extract_strided_slice %100 {offsets = [0, 0], sizes = [8, 32], strides = [1, 1]} : vector<8x128xf32> to vector<8x32xf32>
    %102 = vector.extract_strided_slice %100 {offsets = [0, 32], sizes = [8, 32], strides = [1, 1]} : vector<8x128xf32> to vector<8x32xf32>
    %103 = vector.extract_strided_slice %100 {offsets = [0, 64], sizes = [8, 32], strides = [1, 1]} : vector<8x128xf32> to vector<8x32xf32>
    %cst_25 = arith.constant 2.000000e+00 : f32
    %104 = vector.broadcast %cst_25 : f32 to vector<8x32xf32>
    %105 = arith.mulf %104, %103 : vector<8x32xf32>
    %cst_26 = arith.constant 1.000000e+00 : f32
    %106 = vector.broadcast %cst_26 : f32 to vector<8x32xf32>
    %107 = arith.subf %105, %106 : vector<8x32xf32>
    %108 = vector.extract_strided_slice %100 {offsets = [0, 96], sizes = [8, 32], strides = [1, 1]} : vector<8x128xf32> to vector<8x32xf32>
    %109 = arith.mulf %102, %90 : vector<8x32xf32>
    %110 = arith.mulf %101, %107 : vector<8x32xf32>
    %111 = arith.addf %109, %110 : vector<8x32xf32>
    %112 = math.tanh %111 : vector<8x32xf32>
    %113 = arith.mulf %108, %112 : vector<8x32xf32>
    %114 = vector.extract_strided_slice %6 {offsets = [40, 0], sizes = [8, 128], strides = [1, 1]} : vector<64x128xf32> to vector<8x128xf32>
    %cst_27 = arith.constant dense<0.000000e+00> : vector<8x128xf32>
    %115 = tpu.matmul %113, %1, %cst_27 {dimension_numbers = #tpu.dot_dimension_numbers<[1], [0], [0], [1], [0, 0, 1, 1], [], []>} : vector<8x32xf32>, vector<32x128xf32>, vector<8x128xf32> -> vector<8x128xf32>
    %116 = arith.addf %114, %115 : vector<8x128xf32>
    %117 = arith.negf %116 : vector<8x128xf32>
    %118 = math.exp %117 : vector<8x128xf32>
    %cst_28 = arith.constant 1.000000e+00 : f32
    %119 = vector.broadcast %cst_28 : f32 to vector<8x128xf32>
    %120 = arith.addf %119, %118 : vector<8x128xf32>
    %121 = arith.divf %119, %120 : vector<8x128xf32>
    %122 = vector.extract_strided_slice %121 {offsets = [0, 0], sizes = [8, 32], strides = [1, 1]} : vector<8x128xf32> to vector<8x32xf32>
    %123 = vector.extract_strided_slice %121 {offsets = [0, 32], sizes = [8, 32], strides = [1, 1]} : vector<8x128xf32> to vector<8x32xf32>
    %124 = vector.extract_strided_slice %121 {offsets = [0, 64], sizes = [8, 32], strides = [1, 1]} : vector<8x128xf32> to vector<8x32xf32>
    %cst_29 = arith.constant 2.000000e+00 : f32
    %125 = vector.broadcast %cst_29 : f32 to vector<8x32xf32>
    %126 = arith.mulf %125, %124 : vector<8x32xf32>
    %cst_30 = arith.constant 1.000000e+00 : f32
    %127 = vector.broadcast %cst_30 : f32 to vector<8x32xf32>
    %128 = arith.subf %126, %127 : vector<8x32xf32>
    %129 = vector.extract_strided_slice %121 {offsets = [0, 96], sizes = [8, 32], strides = [1, 1]} : vector<8x128xf32> to vector<8x32xf32>
    %130 = arith.mulf %123, %111 : vector<8x32xf32>
    %131 = arith.mulf %122, %128 : vector<8x32xf32>
    %132 = arith.addf %130, %131 : vector<8x32xf32>
    %133 = math.tanh %132 : vector<8x32xf32>
    %134 = arith.mulf %129, %133 : vector<8x32xf32>
    %135 = vector.extract_strided_slice %6 {offsets = [48, 0], sizes = [8, 128], strides = [1, 1]} : vector<64x128xf32> to vector<8x128xf32>
    %cst_31 = arith.constant dense<0.000000e+00> : vector<8x128xf32>
    %136 = tpu.matmul %134, %1, %cst_31 {dimension_numbers = #tpu.dot_dimension_numbers<[1], [0], [0], [1], [0, 0, 1, 1], [], []>} : vector<8x32xf32>, vector<32x128xf32>, vector<8x128xf32> -> vector<8x128xf32>
    %137 = arith.addf %135, %136 : vector<8x128xf32>
    %138 = arith.negf %137 : vector<8x128xf32>
    %139 = math.exp %138 : vector<8x128xf32>
    %cst_32 = arith.constant 1.000000e+00 : f32
    %140 = vector.broadcast %cst_32 : f32 to vector<8x128xf32>
    %141 = arith.addf %140, %139 : vector<8x128xf32>
    %142 = arith.divf %140, %141 : vector<8x128xf32>
    %143 = vector.extract_strided_slice %142 {offsets = [0, 0], sizes = [8, 32], strides = [1, 1]} : vector<8x128xf32> to vector<8x32xf32>
    %144 = vector.extract_strided_slice %142 {offsets = [0, 32], sizes = [8, 32], strides = [1, 1]} : vector<8x128xf32> to vector<8x32xf32>
    %145 = vector.extract_strided_slice %142 {offsets = [0, 64], sizes = [8, 32], strides = [1, 1]} : vector<8x128xf32> to vector<8x32xf32>
    %cst_33 = arith.constant 2.000000e+00 : f32
    %146 = vector.broadcast %cst_33 : f32 to vector<8x32xf32>
    %147 = arith.mulf %146, %145 : vector<8x32xf32>
    %cst_34 = arith.constant 1.000000e+00 : f32
    %148 = vector.broadcast %cst_34 : f32 to vector<8x32xf32>
    %149 = arith.subf %147, %148 : vector<8x32xf32>
    %150 = vector.extract_strided_slice %142 {offsets = [0, 96], sizes = [8, 32], strides = [1, 1]} : vector<8x128xf32> to vector<8x32xf32>
    %151 = arith.mulf %144, %132 : vector<8x32xf32>
    %152 = arith.mulf %143, %149 : vector<8x32xf32>
    %153 = arith.addf %151, %152 : vector<8x32xf32>
    %154 = math.tanh %153 : vector<8x32xf32>
    %155 = arith.mulf %150, %154 : vector<8x32xf32>
    %156 = vector.extract_strided_slice %6 {offsets = [56, 0], sizes = [8, 128], strides = [1, 1]} : vector<64x128xf32> to vector<8x128xf32>
    %cst_35 = arith.constant dense<0.000000e+00> : vector<8x128xf32>
    %157 = tpu.matmul %155, %1, %cst_35 {dimension_numbers = #tpu.dot_dimension_numbers<[1], [0], [0], [1], [0, 0, 1, 1], [], []>} : vector<8x32xf32>, vector<32x128xf32>, vector<8x128xf32> -> vector<8x128xf32>
    %158 = arith.addf %156, %157 : vector<8x128xf32>
    %159 = arith.negf %158 : vector<8x128xf32>
    %160 = math.exp %159 : vector<8x128xf32>
    %cst_36 = arith.constant 1.000000e+00 : f32
    %161 = vector.broadcast %cst_36 : f32 to vector<8x128xf32>
    %162 = arith.addf %161, %160 : vector<8x128xf32>
    %163 = arith.divf %161, %162 : vector<8x128xf32>
    %164 = vector.extract_strided_slice %163 {offsets = [0, 0], sizes = [8, 32], strides = [1, 1]} : vector<8x128xf32> to vector<8x32xf32>
    %165 = vector.extract_strided_slice %163 {offsets = [0, 32], sizes = [8, 32], strides = [1, 1]} : vector<8x128xf32> to vector<8x32xf32>
    %166 = vector.extract_strided_slice %163 {offsets = [0, 64], sizes = [8, 32], strides = [1, 1]} : vector<8x128xf32> to vector<8x32xf32>
    %cst_37 = arith.constant 2.000000e+00 : f32
    %167 = vector.broadcast %cst_37 : f32 to vector<8x32xf32>
    %168 = arith.mulf %167, %166 : vector<8x32xf32>
    %cst_38 = arith.constant 1.000000e+00 : f32
    %169 = vector.broadcast %cst_38 : f32 to vector<8x32xf32>
    %170 = arith.subf %168, %169 : vector<8x32xf32>
    %171 = vector.extract_strided_slice %163 {offsets = [0, 96], sizes = [8, 32], strides = [1, 1]} : vector<8x128xf32> to vector<8x32xf32>
    %172 = arith.mulf %165, %153 : vector<8x32xf32>
    %173 = arith.mulf %164, %170 : vector<8x32xf32>
    %174 = arith.addf %172, %173 : vector<8x32xf32>
    %175 = math.tanh %174 : vector<8x32xf32>
    %176 = arith.mulf %171, %175 : vector<8x32xf32>
    %c64 = arith.constant 64 : index
    %c0_39 = arith.constant 0 : index
    %177 = vector.load %arg1[%c64, %c0_39] : memref<72x128xf32, #tpu.memory_space<vmem>>, vector<8x1xf32>
    %c168 = arith.constant 168 : index
    %c0_40 = arith.constant 0 : index
    %178 = vector.load %arg2[%c168, %c0_40] : memref<352x128xf32, #tpu.memory_space<vmem>>, vector<32x128xf32>
    %c200 = arith.constant 200 : index
    %c0_41 = arith.constant 0 : index
    %179 = vector.load %arg2[%c200, %c0_41] : memref<352x128xf32, #tpu.memory_space<vmem>>, vector<1x128xf32>
    %c208 = arith.constant 208 : index
    %c0_42 = arith.constant 0 : index
    %180 = vector.load %arg2[%c208, %c0_42] : memref<352x128xf32, #tpu.memory_space<vmem>>, vector<1x128xf32>
    %cst_43 = arith.constant dense<0.000000e+00> : vector<8x128xf32>
    %181 = tpu.matmul %176, %178, %cst_43 {dimension_numbers = #tpu.dot_dimension_numbers<[1], [0], [0], [1], [0, 0, 1, 1], [], []>} : vector<8x32xf32>, vector<32x128xf32>, vector<8x128xf32> -> vector<8x128xf32>
    %182 = vector.broadcast %177 : vector<8x1xf32> to vector<8x128xf32>
    %183 = vector.broadcast %179 : vector<1x128xf32> to vector<8x128xf32>
    %184 = arith.mulf %182, %183 : vector<8x128xf32>
    %185 = arith.addf %181, %184 : vector<8x128xf32>
    %186 = vector.broadcast %180 : vector<1x128xf32> to vector<8x128xf32>
    %187 = arith.addf %185, %186 : vector<8x128xf32>
    %cst_44 = arith.constant 0.000000e+00 : f32
    %188 = vector.broadcast %cst_44 : f32 to vector<8x128xf32>
    %189 = arith.maximumf %187, %188 : vector<8x128xf32>
    %c216 = arith.constant 216 : index
    %c0_45 = arith.constant 0 : index
    %190 = vector.load %arg2[%c216, %c0_45] : memref<352x128xf32, #tpu.memory_space<vmem>>, vector<128x128xf32>
    %c344 = arith.constant 344 : index
    %c0_46 = arith.constant 0 : index
    %191 = vector.load %arg2[%c344, %c0_46] : memref<352x128xf32, #tpu.memory_space<vmem>>, vector<1x128xf32>
    %cst_47 = arith.constant dense<0.000000e+00> : vector<8x128xf32>
    %192 = tpu.matmul %189, %190, %cst_47 {dimension_numbers = #tpu.dot_dimension_numbers<[1], [0], [0], [1], [0, 0, 1, 1], [], []>} : vector<8x128xf32>, vector<128x128xf32>, vector<8x128xf32> -> vector<8x128xf32>
    %193 = vector.broadcast %191 : vector<1x128xf32> to vector<8x128xf32>
    %194 = arith.addf %192, %193 : vector<8x128xf32>
    %c0_48 = arith.constant 0 : index
    %c0_49 = arith.constant 0 : index
    %195 = vector.load %arg3[%c0_48, %c0_49] : memref<8x128xf32, #tpu.memory_space<vmem>>, vector<8x128xf32>
    tpu.vector_store %arg3[%c0_48, %c0_49], %194 {strides = array<i32>} : memref<8x128xf32, #tpu.memory_space<vmem>>, vector<8x128xf32>,
    return
  }
  func.func @transform_0(%arg0: i32) -> (i32, i32) {
    %c0_i32 = arith.constant 0 : i32
    %c0_i32_0 = arith.constant 0 : i32
    return %arg0, %c0_i32 : i32, i32
  }
  func.func @transform_1(%arg0: i32) -> (i32, i32) {
    %c0_i32 = arith.constant 0 : i32
    %c0_i32_0 = arith.constant 0 : i32
    %c0_i32_1 = arith.constant 0 : i32
    return %c0_i32, %c0_i32_0 : i32, i32
  }
  func.func @transform_2(%arg0: i32) -> (i32, i32) {
    %c0_i32 = arith.constant 0 : i32
    %c0_i32_0 = arith.constant 0 : i32
    return %arg0, %c0_i32 : i32, i32
  }
}

</mosaic_0001>

<bundles_post_ra>
// kernel: tempo_predictor.1
= control target key start
LH: loop header
LB: loop body
LE: loop exit
PB: predicated region body
PF: predicated region fallthrough
CT: control target
= control target key end

     0   :  { %7 = vsyncpa [#allocation3], 0  ;;  %s1649_s9 = smov [#allocation2]   ;;  %s1832_s0 = inlined_call_operand.vmem [shape: f32[72,128], index: 0, kind: input, shape index: {}]   ;;  %s1833_s1 = inlined_call_operand.hbm [shape: f32[352,128], index: 1, kind: input, shape index: {}]   ;;  %s1834_s2 = inlined_call_operand.vmem [shape: f32[8,128], index: 2, kind: output, shape index: {}]  }
   0x1   :  { %s15_s10 = sshll.u32 %s1649_s9, 4  ;;  %s1625_s13 = scalar_lea.hbm %s1833_s1, 5632  ;;  %s16_s10 = int_to_ptr.vmem [resolvable:$true] %s15_s10 }
   0x2   :  { %p1626_p0 = scmp.ne.s32.totalorder %s1833_s1, %s1625_s13  ;;  %p1629_p1 = scmp.lt.u32.totalorder %s1625_s13, %s1833_s1 }
   0x4   :  { %p1631_p2 = pnand %p1629_p1, %p1626_p0 }
   0x6   :  { %1634 = shalt.err (!%p1631_p2)
}
   0x7   :  { %s1635_s18 = scalar_lea.vmem %s16_s10, 5632  ;;  %p1640_p4 = scmp.lt.s32.totalorder %s16_s10, %s16_s10 }
   0x8   :  { %p1636_p3 = scmp.ne.s32.totalorder %s16_s10, %s1635_s18  ;;  %p1641_p5 = scmp.lt.s32.totalorder %s1635_s18, %s1635_s18 }
   0xa   :  { %p1642_p6 = por %p1641_p5, %p1640_p4 }
   0xc   :  { %p1643_p7 = pnand %p1642_p6, %p1636_p3 }
   0xe   :  { %1646 = shalt.err (!%p1643_p7)
}
   0xf   :  { %s1650_s19 = smov 128   ;;  %s1651_s20 = smov 8  }
  0x10   :  { %21 = dma.hbm_to_vmem [thread:$0]  %s1833_s1, 5632, %s16_s10, [#allocation3], %s1650_s19, %s1650_s19, %s1651_s20  }
  0x11   :  { %1647 = dma.done.wait [#allocation3], 5632  }
  0x12   :  { %1648 = vsyncadd [#allocation3], 4294961664  ;;  %v1652_v0 = vmov 0.0|0.0   ;;  %vm1653_vm0 = vmmov 0   ;;  %v1654_v1 = vmov 0.0   ;;  %v25_v2 = vld [vmem:[#allocation2] sm:$0xff] }
  0x13   :  { %1489 = vmatprep.subr.bf16.mxu1 %v1652_v0  ;;  %1331 = vmatprep.mubr.msk.f32.mxu1 %vm1653_vm0, %v1654_v1  ;;  %v26_v3 = vld [vmem:[#allocation2 + $0x8] sm:$0xff]  ;;  %v27_v4 = vld [vmem:[#allocation2 + $0x10] sm:$0xff]  ;;  %v28_v6 = vld [vmem:[#allocation2 + $0x18] sm:$0xff]  ;;  %s1655_s26 = smov 64   ;;  %s1656_s27 = smov 32   ;;  %vm163_vm1 = vcmask 261120  }
  0x14   :  { %v1457_v5 = vpack.c.bf16 %v26_v3, %v25_v2  ;;  %v1461_v7 = vpack.c.bf16 %v28_v6, %v27_v4  ;;  %v29_v8 = vld [vmem:[#allocation2 + $0x20] sm:$0xff]  ;;  %v30_v9 = vld [vmem:[#allocation2 + $0x28] sm:$0xff]  ;;  %v31_v12 = vld [vmem:[#allocation2 + $0x30] sm:$0xff] }
  0x15   :  { %v41_v10 = vld [vmem:[#allocation2 + $0x80] sm:$0xff]  ;;  %v1465_v11 = vpack.c.bf16 %v30_v9, %v29_v8  ;;  %v32_v13 = vld [vmem:[#allocation2 + $0x38] sm:$0xff]  ;;  %v42_v14 = vld [vmem:[#allocation2 + $0x88] sm:$0xff] }
  0x16   :  { %1458 = vmatprep.subr.bf16.mxu0 %v1457_v5  ;;  %v1688_v15 = vpack.c.bf16 %v42_v14, %v41_v10  ;;  %v46_v16 = vld [vmem:[%s1832_s0] sm:$0xff]  ;;  %v43_v17 = vld [vmem:[#allocation2 + $0x90] sm:$0xff]  ;;  %v44_v18 = vld [vmem:[#allocation2 + $0x98] sm:$0xff]  ;;  %v1469_v20 = vpack.c.bf16 %v32_v13, %v31_v12 }
  0x17   :  { %1460 = vmatpush3.bf16.msra.mxu0 %v1457_v5  ;;  %1311 = vmatprep.mubr.f32.mxu0 %v46_v16  ;;  %v1694_v19 = vpack.c.bf16 %v44_v18, %v43_v17  ;;  %v33_v21 = vld [vmem:[#allocation2 + $0x40] sm:$0xff]  ;;  %v34_v22 = vld [vmem:[#allocation2 + $0x48] sm:$0xff]  ;;  %v35_v24 = vld [vmem:[#allocation2 + $0x50] sm:$0xff] }
  0x18   :  { %1462 = vmatprep.subr.bf16.mxu0 %v1461_v7  ;;  %1491 = vmatpush3.bf16.msra.mxu1 %v1688_v15  ;;  %v1473_v23 = vpack.c.bf16 %v34_v22, %v33_v21  ;;  %v36_v25 = vld [vmem:[#allocation2 + $0x58] sm:$0xff]  ;;  %v37_v27 = vld [vmem:[#allocation2 + $0x60] sm:$0xff]  ;;  %v38_v28 = vld [vmem:[#allocation2 + $0x68] sm:$0xff] }
  0x19   :  { %1492 = vmatprep.subr.bf16.mxu1 %v1652_v0  ;;  %v1477_v26 = vpack.c.bf16 %v36_v25, %v35_v24  ;;  %v1481_v29 = vpack.c.bf16 %v38_v28, %v37_v27  ;;  %v39_v30 = vld [vmem:[#allocation2 + $0x70] sm:$0xff]  ;;  %v40_v31 = vld [vmem:[#allocation2 + $0x78] sm:$0xff]  ;;  %v47_v33 = vld [vmem:[%s1832_s0 + $0x8] sm:$0xff] }
  0x1a   :  { %v1485_v32 = vpack.c.bf16 %v40_v31, %v39_v30  ;;  %v1710_v36 = vld [vmem:[#allocation2 + $0xa0] ss:$0 sm:$0xff]  ;;  %v48_v9 = vld [vmem:[%s1832_s0 + $0x10] sm:$0xff]  ;;  %v49_v10 = vld [vmem:[%s1832_s0 + $0x18] sm:$0xff] }
  0x1b   :  { %1464 = vmatpush3.bf16.msra.mxu0 %v1461_v7 }
  0x1c   :  { %1466 = vmatprep.subr.bf16.mxu0 %v1465_v11  ;;  %1494 = vmatpush3.bf16.msra.mxu1 %v1694_v19 }
  0x1d   :  { %1495 = vmatprep.subr.bf16.mxu1 %v1652_v0 }
  0x1f   :  { %1468 = vmatpush3.bf16.msra.mxu0 %v1465_v11  ;;  %1332 = vmatmul.mubr.f32.vlgmr.msra.gmra.mrb[0].mxu1 %v1654_v1 }
  0x20   :  { %1470 = vmatprep.subr.bf16.mxu0 %v1469_v20  ;;  %1497 = vmatpush3.bf16.msra.mxu1 %v1688_v15 }
  0x21   :  { %1498 = vmatprep.subr.bf16.mxu1 %v1652_v0  ;;  %1342 = vmatprep.mubr.msk.f32.mxu1 %vm1653_vm0, %v1654_v1 }
  0x23   :  { %1472 = vmatpush3.bf16.msra.mxu0 %v1469_v20 }
  0x24   :  { %1474 = vmatprep.subr.bf16.mxu0 %v1473_v23  ;;  %1500 = vmatpush3.bf16.msra.mxu1 %v1694_v19 }
  0x25   :  { %1501 = vmatprep.subr.bf16.mxu1 %v1652_v0 }
  0x27   :  { %1476 = vmatpush3.bf16.msra.mxu0 %v1473_v23 }
  0x28   :  { %1478 = vmatprep.subr.bf16.mxu0 %v1477_v26 }
  0x2b   :  { %1480 = vmatpush3.bf16.msra.mxu0 %v1477_v26 }
  0x2c   :  { %1482 = vmatprep.subr.bf16.mxu0 %v1481_v29 }
  0x2f   :  { %1484 = vmatpush3.bf16.msra.mxu0 %v1481_v29 }
  0x30   :  { %1486 = vmatprep.subr.bf16.mxu0 %v1485_v32 }
  0x33   :  { %1488 = vmatpush3.bf16.msra.mxu0 %v1485_v32 }
  0x34   :  { %1543 = vmatprep.subr.bf16.mxu0 %v1652_v0 }
  0x36   :  { %1312 = vmatmul.mubr.f32.vlgmr.msra.gmra.mrb[0].mxu0 %v47_v33 }
  0x37   :  { %1314 = vmatprep.mubr.f32.mxu0 %v48_v9 }
  0x3a   :  { %1315 = vmatmul.mubr.f32.gmra.mrb[2].mxu0 %v49_v10 }
  0xf2   :  { %v233_v34 = vpop.f32.mrb[0].mxu1 }
  0xf3   :  { %v1333_v35 = vpop.f32.mrb[1].mxu1 }
 0x109   :  { %v1313_v37 = vpop.f32.mrb[0].mxu0 }
 0x10a   :  { %v124_v38 = vpop.f32.mrb[1].mxu0  ;;  %v130_v56 = vadd.f32 %v1313_v37, %v1710_v36 }
 0x10b   :  { %v125_v39 = vadd.f32 %v1710_v36, %v124_v38 }
 0x10d   :  { %v237_v40 = vadd.f32 %v233_v34, %v125_v39  ;;  %v1316_v14 = vpop.f32.mrb[2].mxu0 }
 0x10e   :  { %v134_v16 = vpop.f32.mrb[3].mxu0  ;;  %v140_v39 = vadd.f32 %v1316_v14, %v1710_v36 }
 0x10f   :  { %v1166_v41 = vmul.f32 -1.442695, %v237_v40  ;;  %v135_v18 = vadd.f32 %v1710_v36, %v134_v16 }
 0x111   :  { %1577 = vpow2.f32 %v1166_v41 }
 0x11b   :  { %v1578_v42 = vpop.eup %1577 }
 0x11c   :  { %v241_v43 = vadd.f32 1.0, %v1578_v42 }
 0x11e   :  { %1579 = vrcp.f32 %v241_v43 }
 0x128   :  { %v1580_v44 = vpop.eup %1579 }
 0x129   :  { %v244_v45 = vmul.f32 2.0, %v1580_v44  ;;  %v246_v49 = vmul.f32 0.0, %v1580_v44 }
 0x12b   :  { %v1167_v46 = vadd.f32 -1.0, %v244_v45 }
 0x12d   :  { %248 = vrot.lane.b32.xlu0 %v1167_v46, %s1655_s26 }
 0x19f   :  { %v249_v47 = vpop.permute.xlu0 %248 }
 0x1a0   :  { %v251_v48 = vmul.f32 %v1580_v44, %v249_v47 }
 0x1a2   :  { %253 = vrot.lane.b32.xlu0 %v251_v48, %s1656_s27 }
 0x214   :  { %v254_v50 = vpop.permute.xlu0 %253 }
 0x215   :  { %v256_v51 = vadd.f32 %v254_v50, %v246_v49 }
 0x217   :  { %1581 = vtanh.f32 %v256_v51 }
 0x221   :  { %v1582_v52 = vpop.eup %1581 }
 0x222   :  { %259 = vrot.lane.b32.xlu1 %v1582_v52, %s1655_s26 }
 0x294   :  { %v260_v53 = vpop.permute.xlu1 %259 }
 0x295   :  { %v262_v54 = vmul.f32 %v1580_v44, %v260_v53 }
 0x297   :  { %264 = vrot.lane.b32.xlu1 %v262_v54, %s1656_s27  ;;  %v50_v54 = vld [vmem:[%s1832_s0 + $0x20] sm:$0xff] }
 0x298   :  { %1317 = vmatprep.mubr.f32.mxu0 %v50_v54 }
 0x309   :  { %v265_v55 = vpop.permute.xlu1 %264 }
 0x30a   :  { %1343 = vmatmul.mubr.msk.f32.vlgmr.msra.gmra.mrb[2].mxu1 %vm163_vm1, %v265_v55  ;;  %v51_v55 = vld [vmem:[%s1832_s0 + $0x28] sm:$0xff] }
 0x30b   :  { %1503 = vmatpush3.bf16.msra.mxu1 %v1688_v15  ;;  %1353 = vmatprep.mubr.msk.f32.mxu1 %vm1653_vm0, %v1654_v1 }
 0x30c   :  { %1504 = vmatprep.subr.bf16.mxu1 %v1652_v0  ;;  %1318 = vmatmul.mubr.f32.gmra.mrb[4].mxu0 %v51_v55 }
 0x30f   :  { %1506 = vmatpush3.bf16.msra.mxu1 %v1694_v19 }
 0x310   :  { %1507 = vmatprep.subr.bf16.mxu1 %v1652_v0 }
 0x3dd   :  { %v334_v57 = vpop.f32.mrb[2].mxu1 }
 0x3de   :  { %v338_v58 = vadd.f32 %v334_v57, %v130_v56  ;;  %v1344_v59 = vpop.f32.mrb[3].mxu1 }
 0x3df   :  { %v1319_v59 = vpop.f32.mrb[4].mxu0 }
 0x3e0   :  { %v1169_v60 = vmul.f32 -1.442695, %v338_v58 }
 0x3e2   :  { %1583 = vpow2.f32 %v1169_v60  ;;  %v144_v60 = vpop.f32.mrb[5].mxu0 }
 0x3ec   :  { %v1584_v61 = vpop.eup %1583 }
 0x3ed   :  { %v342_v62 = vadd.f32 1.0, %v1584_v61 }
 0x3ef   :  { %1585 = vrcp.f32 %v342_v62  ;;  %v145_v62 = vadd.f32 %v1710_v36, %v144_v60 }
 0x3f9   :  { %v1586_v63 = vpop.eup %1585 }
 0x3fa   :  { %v345_v2 = vmul.f32 2.0, %v1586_v63  ;;  %v347_v6 = vmul.f32 %v1586_v63, %v256_v51 }
 0x3fc   :  { %v1170_v3 = vadd.f32 -1.0, %v345_v2 }
 0x3fe   :  { %349 = vrot.lane.b32.xlu0 %v1170_v3, %s1655_s26 }
 0x470   :  { %v350_v4 = vpop.permute.xlu0 %349 }
 0x471   :  { %v352_v5 = vmul.f32 %v1586_v63, %v350_v4 }
 0x473   :  { %354 = vrot.lane.b32.xlu1 %v352_v5, %s1656_s27 }
 0x4e5   :  { %v355_v7 = vpop.permute.xlu1 %354 }
 0x4e6   :  { %v357_v8 = vadd.f32 %v355_v7, %v347_v6 }
 0x4e8   :  { %1587 = vtanh.f32 %v357_v8 }
 0x4f2   :  { %v1588_v11 = vpop.eup %1587 }
 0x4f3   :  { %360 = vrot.lane.b32.xlu0 %v1588_v11, %s1655_s26 }
 0x565   :  { %v361_v12 = vpop.permute.xlu0 %360 }
 0x566   :  { %v363_v13 = vmul.f32 %v1586_v63, %v361_v12 }
 0x568   :  { %365 = vrot.lane.b32.xlu1 %v363_v13, %s1656_s27 }
 0x5da   :  { %v366_v17 = vpop.permute.xlu1 %365 }
 0x5db   :  { %1354 = vmatmul.mubr.msk.f32.vlgmr.msra.gmra.mrb[4].mxu1 %vm163_vm1, %v366_v17 }
 0x5dc   :  { %1509 = vmatpush3.bf16.msra.mxu1 %v1688_v15  ;;  %1364 = vmatprep.mubr.msk.f32.mxu1 %vm1653_vm0, %v1654_v1 }
 0x5dd   :  { %1510 = vmatprep.subr.bf16.mxu1 %v1652_v0 }
 0x5e0   :  { %1512 = vmatpush3.bf16.msra.mxu1 %v1694_v19 }
 0x5e1   :  { %1513 = vmatprep.subr.bf16.mxu1 %v1652_v0 }
 0x6ae   :  { %v435_v20 = vpop.f32.mrb[4].mxu1 }
 0x6af   :  { %v439_v21 = vadd.f32 %v435_v20, %v135_v18  ;;  %v1355_v22 = vpop.f32.mrb[5].mxu1 }
 0x6b1   :  { %v1172_v23 = vmul.f32 -1.442695, %v439_v21  ;;  %v150_v21 = vadd.f32 %v1319_v59, %v1710_v36 }
 0x6b3   :  { %1589 = vpow2.f32 %v1172_v23 }
 0x6bd   :  { %v1590_v24 = vpop.eup %1589 }
 0x6be   :  { %v443_v25 = vadd.f32 1.0, %v1590_v24 }
 0x6c0   :  { %1591 = vrcp.f32 %v443_v25 }
 0x6ca   :  { %v1592_v26 = vpop.eup %1591 }
 0x6cb   :  { %v446_v27 = vmul.f32 2.0, %v1592_v26  ;;  %v448_v31 = vmul.f32 %v1592_v26, %v357_v8 }
 0x6cd   :  { %v1173_v28 = vadd.f32 -1.0, %v446_v27 }
 0x6cf   :  { %450 = vrot.lane.b32.xlu0 %v1173_v28, %s1655_s26 }
 0x741   :  { %v451_v29 = vpop.permute.xlu0 %450 }
 0x742   :  { %v453_v30 = vmul.f32 %v1592_v26, %v451_v29 }
 0x744   :  { %455 = vrot.lane.b32.xlu1 %v453_v30, %s1656_s27 }
 0x7b6   :  { %v456_v32 = vpop.permute.xlu1 %455 }
 0x7b7   :  { %v458_v33 = vadd.f32 %v456_v32, %v448_v31 }
 0x7b9   :  { %1593 = vtanh.f32 %v458_v33 }
 0x7c3   :  { %v1594_v34 = vpop.eup %1593 }
 0x7c4   :  { %461 = vrot.lane.b32.xlu0 %v1594_v34, %s1655_s26 }
 0x836   :  { %v462_v35 = vpop.permute.xlu0 %461 }
 0x837   :  { %v464_v37 = vmul.f32 %v1592_v26, %v462_v35 }
 0x839   :  { %466 = vrot.lane.b32.xlu1 %v464_v37, %s1656_s27  ;;  %v52_v37 = vld [vmem:[%s1832_s0 + $0x30] sm:$0xff] }
 0x83a   :  { %1320 = vmatprep.mubr.f32.mxu0 %v52_v37 }
 0x8ab   :  { %v467_v38 = vpop.permute.xlu1 %466 }
 0x8ac   :  { %1365 = vmatmul.mubr.msk.f32.vlgmr.msra.gmra.mrb[6].mxu1 %vm163_vm1, %v467_v38  ;;  %v53_v38 = vld [vmem:[%s1832_s0 + $0x38] sm:$0xff] }
 0x8ad   :  { %1515 = vmatpush3.bf16.msra.mxu1 %v1688_v15  ;;  %1375 = vmatprep.mubr.msk.f32.mxu1 %vm1653_vm0, %v1654_v1 }
 0x8ae   :  { %1516 = vmatprep.subr.bf16.mxu1 %v1652_v0  ;;  %1321 = vmatmul.mubr.f32.gmra.mrb[6].mxu0 %v53_v38 }
 0x8af   :  { %1454 = vmatprep.mubr.msk.f32.mxu0 %vm1653_vm0, %v1654_v1 }
 0x8b1   :  { %1518 = vmatpush3.bf16.msra.mxu1 %v1694_v19 }
 0x8b2   :  { %1519 = vmatprep.subr.bf16.mxu1 %v1652_v0 }
 0x97f   :  { %v536_v40 = vpop.f32.mrb[6].mxu1 }
 0x980   :  { %v540_v41 = vadd.f32 %v536_v40, %v140_v39  ;;  %v1366_v42 = vpop.f32.mrb[7].mxu1 }
 0x981   :  { %v1322_v42 = vpop.f32.mrb[6].mxu0 }
 0x982   :  { %v1175_v43 = vmul.f32 -1.442695, %v540_v41 }
 0x984   :  { %1595 = vpow2.f32 %v1175_v43  ;;  %v154_v43 = vpop.f32.mrb[7].mxu0 }
 0x98e   :  { %v1596_v44 = vpop.eup %1595 }
 0x98f   :  { %v544_v45 = vadd.f32 1.0, %v1596_v44 }
 0x991   :  { %1597 = vrcp.f32 %v544_v45  ;;  %v155_v45 = vadd.f32 %v1710_v36, %v154_v43  ;;  %v1079_v43 = vld [vmem:[#allocation2 + $0x130] sm:$0xff] }
 0x99b   :  { %v1598_v46 = vpop.eup %1597 }
 0x99c   :  { %v547_v47 = vmul.f32 2.0, %v1598_v46  ;;  %v549_v51 = vmul.f32 %v1598_v46, %v458_v33 }
 0x99e   :  { %v1176_v48 = vadd.f32 -1.0, %v547_v47 }
 0x9a0   :  { %551 = vrot.lane.b32.xlu0 %v1176_v48, %s1655_s26 }
 0xa12   :  { %v552_v49 = vpop.permute.xlu0 %551 }
 0xa13   :  { %v554_v50 = vmul.f32 %v1598_v46, %v552_v49 }
 0xa15   :  { %556 = vrot.lane.b32.xlu1 %v554_v50, %s1656_s27 }
 0xa87   :  { %v557_v52 = vpop.permute.xlu1 %556 }
 0xa88   :  { %v559_v53 = vadd.f32 %v557_v52, %v549_v51 }
 0xa8a   :  { %1599 = vtanh.f32 %v559_v53 }
 0xa94   :  { %v1600_v56 = vpop.eup %1599 }
 0xa95   :  { %562 = vrot.lane.b32.xlu0 %v1600_v56, %s1655_s26 }
 0xb07   :  { %v563_v57 = vpop.permute.xlu0 %562 }
 0xb08   :  { %v565_v58 = vmul.f32 %v1598_v46, %v563_v57 }
 0xb0a   :  { %567 = vrot.lane.b32.xlu1 %v565_v58, %s1656_s27 }
 0xb7c   :  { %v568_v61 = vpop.permute.xlu1 %567 }
 0xb7d   :  { %1376 = vmatmul.mubr.msk.f32.vlgmr.msra.gmra.mrb[8].mxu1 %vm163_vm1, %v568_v61 }
 0xb7e   :  { %1521 = vmatpush3.bf16.msra.mxu1 %v1688_v15  ;;  %1386 = vmatprep.mubr.msk.f32.mxu1 %vm1653_vm0, %v1654_v1 }
 0xb7f   :  { %1522 = vmatprep.subr.bf16.mxu1 %v1652_v0 }
 0xb82   :  { %1524 = vmatpush3.bf16.msra.mxu1 %v1694_v19 }
 0xb83   :  { %1525 = vmatprep.subr.bf16.mxu1 %v1652_v0 }
 0xc50   :  { %v637_v63 = vpop.f32.mrb[8].mxu1 }
 0xc51   :  { %v641_v2 = vadd.f32 %v637_v63, %v145_v62  ;;  %v1377_v3 = vpop.f32.mrb[9].mxu1  ;;  %v160_v62 = vadd.f32 %v1322_v42, %v1710_v36  ;;  %v1078_v42 = vld [vmem:[#allocation2 + $0x128] sm:$0xff] }
 0xc53   :  { %v1178_v4 = vmul.f32 -1.442695, %v641_v2 }
 0xc55   :  { %1601 = vpow2.f32 %v1178_v4 }
 0xc5f   :  { %v1602_v5 = vpop.eup %1601 }
 0xc60   :  { %v645_v6 = vadd.f32 1.0, %v1602_v5 }
 0xc62   :  { %1603 = vrcp.f32 %v645_v6 }
 0xc6c   :  { %v1604_v7 = vpop.eup %1603 }
 0xc6d   :  { %v648_v8 = vmul.f32 2.0, %v1604_v7  ;;  %v650_v12 = vmul.f32 %v1604_v7, %v559_v53 }
 0xc6f   :  { %v1179_v9 = vadd.f32 -1.0, %v648_v8 }
 0xc71   :  { %652 = vrot.lane.b32.xlu0 %v1179_v9, %s1655_s26 }
 0xce3   :  { %v653_v10 = vpop.permute.xlu0 %652 }
 0xce4   :  { %v655_v11 = vmul.f32 %v1604_v7, %v653_v10 }
 0xce6   :  { %657 = vrot.lane.b32.xlu1 %v655_v11, %s1656_s27 }
 0xd58   :  { %v658_v13 = vpop.permute.xlu1 %657 }
 0xd59   :  { %v660_v14 = vadd.f32 %v658_v13, %v650_v12  ;;  %v971_v13 = vld [vmem:[#allocation2 + $0xa8] sm:$0xff] }
 0xd5b   :  { %1605 = vtanh.f32 %v660_v14 }
 0xd65   :  { %v1606_v16 = vpop.eup %1605 }
 0xd66   :  { %663 = vrot.lane.b32.xlu0 %v1606_v16, %s1655_s26  ;;  %v973_v16 = vld [vmem:[#allocation2 + $0xb8] sm:$0xff] }
 0xdd8   :  { %v664_v17 = vpop.permute.xlu0 %663 }
 0xdd9   :  { %v666_v18 = vmul.f32 %v1604_v7, %v664_v17 }
 0xddb   :  { %668 = vrot.lane.b32.xlu1 %v666_v18, %s1656_s27  ;;  %v974_v18 = vld [vmem:[#allocation2 + $0xc0] sm:$0xff] }
 0xe4d   :  { %v669_v20 = vpop.permute.xlu1 %668 }
 0xe4e   :  { %1387 = vmatmul.mubr.msk.f32.vlgmr.msra.gmra.mrb[10].mxu1 %vm163_vm1, %v669_v20  ;;  %v1541_v20 = vpack.c.bf16 %v974_v18, %v973_v16 }
 0xe4f   :  { %1527 = vmatpush3.bf16.msra.mxu1 %v1688_v15  ;;  %1397 = vmatprep.mubr.msk.f32.mxu1 %vm1653_vm0, %v1654_v1 }
 0xe50   :  { %1528 = vmatprep.subr.bf16.mxu1 %v1652_v0 }
 0xe53   :  { %1530 = vmatpush3.bf16.msra.mxu1 %v1694_v19 }
 0xe54   :  { %1531 = vmatprep.subr.bf16.mxu1 %v1652_v0 }
 0xf21   :  { %v738_v22 = vpop.f32.mrb[10].mxu1 }
 0xf22   :  { %v742_v23 = vadd.f32 %v738_v22, %v150_v21  ;;  %v1388_v24 = vpop.f32.mrb[11].mxu1  ;;  %v970_v22 = vld [vmem:[%s1832_s0 + $0x40] sm:$0xff] }
 0xf23   :  { %v1069_v24 = vld [vmem:[#allocation2 + $0xe0] sm:$0xff] }
 0xf24   :  { %v1181_v25 = vmul.f32 -1.442695, %v742_v23  ;;  %v1068_v23 = vld [vmem:[#allocation2 + $0xd8] sm:$0xff] }
 0xf26   :  { %1607 = vpow2.f32 %v1181_v25  ;;  %v1657_v25 = vmov 0  }
 0xf27   :  { %1576 = vset.pattern.permute.xlu0 %v1657_v25 }
 0xf30   :  { %v1608_v26 = vpop.eup %1607 }
 0xf31   :  { %v746_v27 = vadd.f32 1.0, %v1608_v26  ;;  %v1544_v26 = vpack.c.bf16 %v1069_v24, %v1068_v23 }
 0xf33   :  { %1609 = vrcp.f32 %v746_v27  ;;  %v1070_v27 = vld [vmem:[#allocation2 + $0xe8] sm:$0xff]  ;;  %1545 = vmatpush3.bf16.msra.mxu0 %v1544_v26 }
 0xf34   :  { %1546 = vmatprep.subr.bf16.mxu0 %v1652_v0 }
 0xf3d   :  { %v1610_v28 = vpop.eup %1609 }
 0xf3e   :  { %v749_v29 = vmul.f32 2.0, %v1610_v28  ;;  %v751_v33 = vmul.f32 %v1610_v28, %v660_v14  ;;  %v972_v14 = vld [vmem:[#allocation2 + $0xb0] sm:$0xff] }
 0xf3f   :  { %v1538_v17 = vpack.c.bf16 %v972_v14, %v971_v13 }
 0xf40   :  { %v1182_v30 = vadd.f32 -1.0, %v749_v29 }
 0xf42   :  { %753 = vrot.lane.b32.xlu0 %v1182_v30, %s1655_s26  ;;  %v1072_v30 = vld [vmem:[#allocation2 + $0xf8] sm:$0xff] }
 0xfb4   :  { %v754_v31 = vpop.permute.xlu0 %753 }
 0xfb5   :  { %v756_v32 = vmul.f32 %v1610_v28, %v754_v31  ;;  %v1073_v31 = vld [vmem:[#allocation2 + $0x100] sm:$0xff] }
 0xfb7   :  { %758 = vrot.lane.b32.xlu1 %v756_v32, %s1656_s27  ;;  %v1550_v32 = vpack.c.bf16 %v1073_v31, %v1072_v30 }
0x1029   :  { %v759_v34 = vpop.permute.xlu1 %758 }
0x102a   :  { %v761_v35 = vadd.f32 %v759_v34, %v751_v33  ;;  %v1074_v33 = vld [vmem:[#allocation2 + $0x108] sm:$0xff]  ;;  %v1075_v34 = vld [vmem:[#allocation2 + $0x110] sm:$0xff] }
0x102b   :  { %v1553_v38 = vpack.c.bf16 %v1075_v34, %v1074_v33 }
0x102c   :  { %1611 = vtanh.f32 %v761_v35 }
0x1036   :  { %v1612_v39 = vpop.eup %1611 }
0x1037   :  { %764 = vrot.lane.b32.xlu0 %v1612_v39, %s1655_s26  ;;  %v1076_v39 = vld [vmem:[#allocation2 + $0x118] sm:$0xff] }
0x10a9   :  { %v765_v40 = vpop.permute.xlu0 %764 }
0x10aa   :  { %v767_v41 = vmul.f32 %v1610_v28, %v765_v40  ;;  %v1071_v28 = vld [vmem:[#allocation2 + $0xf0] sm:$0xff]  ;;  %v1077_v40 = vld [vmem:[#allocation2 + $0x120] sm:$0xff] }
0x10ab   :  { %v1547_v29 = vpack.c.bf16 %v1071_v28, %v1070_v27 }
0x10ac   :  { %769 = vrot.lane.b32.xlu1 %v767_v41, %s1656_s27  ;;  %v1556_v41 = vpack.c.bf16 %v1077_v40, %v1076_v39 }
0x10ad   :  { %1548 = vmatpush3.bf16.msra.mxu0 %v1547_v29 }
0x10ae   :  { %1549 = vmatprep.subr.bf16.mxu0 %v1652_v0 }
0x10b1   :  { %1551 = vmatpush3.bf16.msra.mxu0 %v1550_v32 }
0x10b2   :  { %1552 = vmatprep.subr.bf16.mxu0 %v1652_v0 }
0x10b5   :  { %1554 = vmatpush3.bf16.msra.mxu0 %v1553_v38 }
0x10b6   :  { %1555 = vmatprep.subr.bf16.mxu0 %v1652_v0 }
0x10b9   :  { %1557 = vmatpush3.bf16.msra.mxu0 %v1556_v41 }
0x10ba   :  { %1558 = vmatprep.subr.bf16.mxu0 %v1652_v0 }
0x111e   :  { %v770_v44 = vpop.permute.xlu1 %769 }
0x111f   :  { %1398 = vmatmul.mubr.msk.f32.vlgmr.msra.gmra.mrb[12].mxu1 %vm163_vm1, %v770_v44  ;;  %v1559_v44 = vpack.c.bf16 %v1079_v43, %v1078_v42 }
0x1120   :  { %1533 = vmatpush3.bf16.msra.mxu1 %v1688_v15  ;;  %1408 = vmatprep.mubr.msk.f32.mxu1 %vm1653_vm0, %v1654_v1 }
0x1121   :  { %1534 = vmatprep.subr.bf16.mxu1 %v1652_v0  ;;  %1560 = vmatpush3.bf16.msra.mxu0 %v1559_v44 }
0x1122   :  { %1561 = vmatprep.subr.bf16.mxu0 %v1652_v0 }
0x1124   :  { %1536 = vmatpush3.bf16.msra.mxu1 %v1694_v19 }
0x1125   :  { %1537 = vmatprep.subr.bf16.mxu1 %v1652_v0 }
0x11f2   :  { %v839_v46 = vpop.f32.mrb[12].mxu1 }
0x11f3   :  { %v843_v47 = vadd.f32 %v839_v46, %v155_v45  ;;  %v1399_v48 = vpop.f32.mrb[13].mxu1  ;;  %v1080_v46 = vld [vmem:[#allocation2 + $0x138] sm:$0xff] }
0x11f5   :  { %v1184_v49 = vmul.f32 -1.442695, %v843_v47  ;;  %v1081_v47 = vld [vmem:[#allocation2 + $0x140] sm:$0xff] }
0x11f6   :  { %v1562_v48 = vpack.c.bf16 %v1081_v47, %v1080_v46 }
0x11f7   :  { %1613 = vpow2.f32 %v1184_v49  ;;  %v1082_v49 = vld [vmem:[#allocation2 + $0x148] sm:$0xff] }
0x11f8   :  { %1563 = vmatpush3.bf16.msra.mxu0 %v1562_v48 }
0x11f9   :  { %1564 = vmatprep.subr.bf16.mxu0 %v1652_v0 }
0x1201   :  { %v1614_v50 = vpop.eup %1613 }
0x1202   :  { %v847_v51 = vadd.f32 1.0, %v1614_v50  ;;  %v1083_v50 = vld [vmem:[#allocation2 + $0x150] sm:$0xff] }
0x1204   :  { %1615 = vrcp.f32 %v847_v51  ;;  %v1565_v51 = vpack.c.bf16 %v1083_v50, %v1082_v49 }
0x1206   :  { %1566 = vmatpush3.bf16.msra.mxu0 %v1565_v51 }
0x120e   :  { %v1616_v15 = vpop.eup %1615 }
0x120f   :  { %v850_v52 = vmul.f32 2.0, %v1616_v15  ;;  %v852_v19 = vmul.f32 %v1616_v15, %v761_v35 }
0x1211   :  { %v1185_v53 = vadd.f32 -1.0, %v850_v52 }
0x1213   :  { %854 = vrot.lane.b32.xlu0 %v1185_v53, %s1655_s26 }
0x1285   :  { %v855_v54 = vpop.permute.xlu0 %854 }
0x1286   :  { %v857_v55 = vmul.f32 %v1616_v15, %v855_v54  ;;  %v1191_v54 = vld [vmem:[#allocation2 + $0xd0] ss:$0 sm:$0xff] }
0x1288   :  { %859 = vrot.lane.b32.xlu1 %v857_v55, %s1656_s27 }
0x12fa   :  { %v860_v56 = vpop.permute.xlu1 %859 }
0x12fb   :  { %v862_v57 = vadd.f32 %v860_v56, %v852_v19 }
0x12fd   :  { %1617 = vtanh.f32 %v862_v57 }
0x1307   :  { %v1618_v58 = vpop.eup %1617 }
0x1308   :  { %865 = vrot.lane.b32.xlu0 %v1618_v58, %s1655_s26 }
0x137a   :  { %v866_v59 = vpop.permute.xlu0 %865 }
0x137b   :  { %v868_v60 = vmul.f32 %v1616_v15, %v866_v59  ;;  %v1189_v15 = vld [vmem:[#allocation2 + $0xc8] ss:$0 sm:$0xff]  ;;  %v1192_v59 = vld [vmem:[#allocation2 + $0x158] ss:$0 sm:$0xff] }
0x137d   :  { %870 = vrot.lane.b32.xlu1 %v868_v60, %s1656_s27 }
0x13ef   :  { %v871_v61 = vpop.permute.xlu1 %870 }
0x13f0   :  { %1409 = vmatmul.mubr.msk.f32.vlgmr.msra.gmra.mrb[14].mxu1 %vm163_vm1, %v871_v61 }
0x13f1   :  { %1419 = vmatprep.mubr.msk.f32.mxu1 %vm1653_vm0, %v1654_v1  ;;  %1539 = vmatpush3.bf16.msra.mxu1 %v1538_v17 }
0x13f2   :  { %1540 = vmatprep.subr.bf16.mxu1 %v1652_v0 }
0x13f5   :  { %1542 = vmatpush3.bf16.msra.mxu1 %v1541_v20 }
0x14c3   :  { %v940_v63 = vpop.f32.mrb[14].mxu1 }
0x14c4   :  { %v944_v2 = vadd.f32 %v940_v63, %v160_v62  ;;  %v1410_v3 = vpop.f32.mrb[15].mxu1 }
0x14c6   :  { %v1187_v4 = vmul.f32 -1.442695, %v944_v2 }
0x14c8   :  { %1619 = vpow2.f32 %v1187_v4 }
0x14d2   :  { %v1620_v5 = vpop.eup %1619 }
0x14d3   :  { %v948_v6 = vadd.f32 1.0, %v1620_v5 }
0x14d5   :  { %1621 = vrcp.f32 %v948_v6 }
0x14df   :  { %v1622_v7 = vpop.eup %1621 }
0x14e0   :  { %v951_v8 = vmul.f32 2.0, %v1622_v7  ;;  %v953_v1 = vmul.f32 %v1622_v7, %v862_v57 }
0x14e2   :  { %v1188_v9 = vadd.f32 -1.0, %v951_v8 }
0x14e4   :  { %955 = vrot.lane.b32.xlu0 %v1188_v9, %s1655_s26 }
0x1556   :  { %v956_v10 = vpop.permute.xlu0 %955 }
0x1557   :  { %v958_v11 = vmul.f32 %v1622_v7, %v956_v10 }
0x1559   :  { %960 = vrot.lane.b32.xlu1 %v958_v11, %s1656_s27 }
0x15cb   :  { %v961_v12 = vpop.permute.xlu1 %960 }
0x15cc   :  { %v963_v36 = vadd.f32 %v961_v12, %v953_v1 }
0x15ce   :  { %1623 = vtanh.f32 %v963_v36 }
0x15d8   :  { %v1624_v21 = vpop.eup %1623 }
0x15d9   :  { %966 = vrot.lane.b32.xlu0 %v1624_v21, %s1655_s26 }
0x15dd   :  { %979 = vperm.xlu0 %1576, %v970_v22  }
0x164b   :  { %v967_v35 = vpop.permute.xlu0 %966 }
0x164c   :  { %v969_v37 = vmul.f32 %v1622_v7, %v967_v35 }
0x164e   :  { %988 = vrot.lane.b32.xlu1 %v969_v37, %s1656_s27 }
0x165c   :  { %v980_v52 = vpop.permute.xlu0 %979 }
0x165d   :  { %v986_v53 = vmul.f32 %v1189_v15, %v980_v52 }
0x16c0   :  { %v989_v45 = vpop.permute.xlu1 %988 }
0x16c1   :  { %1420 = vmatmul.mubr.msk.f32.vlgmr.msra.gmra.mrb[16].mxu1 %vm163_vm1, %v989_v45 }
0x1794   :  { %v1058_v55 = vpop.f32.mrb[16].mxu1 }
0x1795   :  { %v1059_v19 = vadd.f32 %v1058_v55, %v986_v53  ;;  %v1421_v56 = vpop.f32.mrb[17].mxu1 }
0x1797   :  { %v1066_v57 = vadd.f32 %v1191_v54, %v1059_v19 }
0x1799   :  { %v1067_v58 = vmax.f32 %v1066_v57, 0.0 }
0x179b   :  { %1455 = vmatmul.mubr.f32.vlgmr.msra.gmra.mrb[8].mxu0 %v1067_v58 }
0x186e   :  { %v1155_v60 = vpop.f32.mrb[8].mxu0 }
0x186f   :  { %v1156_v61 = vadd.f32 %v1192_v59, %v1155_v60  ;;  %v1456_v62 = vpop.f32.mrb[9].mxu0 }
0x1871   :  { %1159 = vst [vmem:[%s1834_s2] sm:$0xff] %v1156_v61 }
0x1872   :  { %1164 = vsyncpa [#allocation3], 1 }

</bundles_post_ra>
